<compile_context>
chip_gen: v7x
topology: tpu7x:2x2x1
jax: 0.10.0
libtpu: 0.0.40
codegen_flags: <defaults>
</compile_context>

<pallas_src>
import functools

import jax
import jax.numpy as jnp
from jax import lax
from jax.experimental import pallas as pl
from jax.experimental.pallas import tpu as pltpu


LANES = 128  # pad Cout to a full lane group -> every store is an unmasked vst


# ----------------------------------------------------------------------------
# The fused kernel
# ----------------------------------------------------------------------------
def _fused_conv_bn_act_kernel(p_ref, w_ref, g_ref, b_ref, o_ref, *,
                              count, eps, negative_slope):
    """conv-as-GEMM + BatchNorm2d(train, batch stats) + optional LeakyReLU.

    p_ref: (Mtot, K)    im2col patches, Mtot = Nu*OH*OW exact rows (no junk)
    w_ref: (K, LANES)   im2col-packed weights, zero-padded to 128 lanes
    g_ref: (1, LANES)   gamma, zero-padded
    b_ref: (1, LANES)   beta,  zero-padded
    o_ref: (Mtot, LANES)
    """
    acc = jnp.dot(p_ref[...], w_ref[...],
                  preferred_element_type=jnp.float32)           # single MXU GEMM
    inv_count = jnp.float32(1.0 / count)
    mean = jnp.sum(acc, axis=0, keepdims=True) * inv_count       # (1, LANES)
    centered = acc - mean                                        # centered variance
    var = jnp.sum(centered * centered, axis=0, keepdims=True) * inv_count
    inv = lax.rsqrt(var + jnp.float32(eps))                      # EUP slot (~free)
    scale = g_ref[...] * inv                                     # padded lanes -> 0
    shift = b_ref[...] - mean * scale
    y = acc * scale + shift
    if negative_slope is not None:                               # optional LeakyReLU
        y = jnp.where(y >= 0, y, jnp.float32(negative_slope) * y)
    o_ref[...] = y.astype(o_ref.dtype)                           # lane-dense store


# ----------------------------------------------------------------------------
# One-time layout packing ("parameter / buffer registration")
# ----------------------------------------------------------------------------
def _pack_params(weight_oihw, gamma, beta, dtype):
    """Weights packed for im2col GEMM in the ACTIVATION dtype; gamma/beta f32."""
    Cout, Cin, KH, KW = weight_oihw.shape
    w = jnp.transpose(weight_oihw, (2, 3, 1, 0)).astype(dtype)   # (KH,KW,Cin,Cout)
    w = w.reshape(KH * KW * Cin, Cout)
    w_packed = jnp.zeros((KH * KW * Cin, LANES), dtype).at[:, :Cout].set(w)
    g = jnp.zeros((1, LANES), jnp.float32).at[0, :Cout].set(gamma.astype(jnp.float32))
    b = jnp.zeros((1, LANES), jnp.float32).at[0, :Cout].set(beta.astype(jnp.float32))
    return w_packed, g, b


def _im2col(x_nhwc, KH, KW):
    """(N,H,W,C) -> (N*OH*OW, KH*KW*C) exact patches (valid, stride 1), ordered
    [kh, kw, cin] to match the packed weights.  One-time preprocessing: for the
    fixed-input module this runs once at construction, never on the forward."""
    N, H, W, C = x_nhwc.shape
    OH, OW = H - KH + 1, W - KW + 1
    taps = [x_nhwc[:, kh:kh + OH, kw:kw + OW, :]
            for kh in range(KH) for kw in range(KW)]
    patches = jnp.stack(taps, axis=3)                    # (N, OH, OW, KH*KW, C)
    return patches.reshape(N * OH * OW, KH * KW * C)


# ----------------------------------------------------------------------------
# Fused conv + BN(train) + activation — one pallas_call
# ----------------------------------------------------------------------------
def fused_conv_bn_act(patches, w_packed, gamma_pad, beta_pad, *,
                      nu, OH, OW, Cout, eps=1e-5, negative_slope=None,
                      out_dtype=None):
    """patches: (nu*OH*OW, KH*KW*Cin). Returns NCHW (nu, Cout, OH, OW)."""
    Mtot, K = patches.shape
    assert Mtot == nu * OH * OW
    out_dtype = patches.dtype if out_dtype is None else out_dtype
    out_bytes = Mtot * LANES * jnp.dtype(out_dtype).itemsize

    # TODO(synk): for large nu*OH*OW tile the GEMM over the M (batch*spatial)
    # axis with a persistent f32 acc scratch — mandatory on v7x's 64 MiB VMEM
    # well before v5e/v6e; at these shapes one resident block is optimal.
    io_bytes = (patches.size * patches.dtype.itemsize
                + w_packed.size * w_packed.dtype.itemsize
                + gamma_pad.size * 4 + beta_pad.size * 4 + out_bytes)
    vmem_limit = int(min(2 * io_bytes + 4 * Mtot * LANES * 4 + (2 << 20),
                         64 << 20))

    out = pl.pallas_call(
        functools.partial(_fused_conv_bn_act_kernel, count=float(Mtot),
                          eps=float(eps), negative_slope=negative_slope),
        out_shape=jax.ShapeDtypeStruct((Mtot, LANES), out_dtype),
        compiler_params=pltpu.CompilerParams(vmem_limit_bytes=vmem_limit),
        cost_estimate=pl.CostEstimate(
            flops=int(2 * Mtot * K * LANES + 10 * Mtot * LANES),
            transcendentals=LANES,
            bytes_accessed=int(io_bytes)),
    )(patches, w_packed, gamma_pad, beta_pad)

    # Thin un-padding + NCHW for PyTorch parity; runs on the UNIQUE samples
    # only (nu == 1 on the fixed-input path), so it is a tiny one-off.
    out = out[:, :Cout].reshape(nu, OH, OW, Cout)
    return jnp.transpose(out, (0, 3, 1, 2))


def conv_bn_act_nchw(x_nchw, weight_oihw, bias, gamma, beta, *,
                     eps=1e-5, negative_slope=None):
    """Generic distinct-batch entry point through the same fused kernel.
    `bias` accepted for API parity but unused: cancelled by training-mode BN."""
    del bias
    N, _, H, W = x_nchw.shape
    Cout, _, KH, KW = weight_oihw.shape
    patches = _im2col(jnp.transpose(x_nchw, (0, 2, 3, 1)), KH, KW)
    w_packed, g, b = _pack_params(weight_oihw, gamma, beta, dtype=x_nchw.dtype)
    return fused_conv_bn_act(patches, w_packed, g, b, nu=N,
                             OH=H - KH + 1, OW=W - KW + 1, Cout=Cout,
                             eps=eps, negative_slope=negative_slope)


# ----------------------------------------------------------------------------
# The module equivalent
# ----------------------------------------------------------------------------
class FixedInputSGGenViewPallas:
    """Pallas equivalent of FixedInputSGGenView: stores the coarsest input and
    exact size once, expands to `num_samples` at every forward call.  The SGNet
    view is represented by Conv2d + BatchNorm2d(train) + LeakyReLU."""

    def __init__(self, conv_weight_oihw, conv_bias, bn_gamma, bn_beta,
                 coarsest_input_nchw, coarsest_exact_size=None,
                 *, eps=1e-5, negative_slope=None):
        if coarsest_exact_size is None:
            coarsest_exact_size = tuple(
                float(d) for d in coarsest_input_nchw.shape[2:4])
        self.coarsest_exact_size = coarsest_exact_size   # bookkeeping (as in torch)
        self.eps = float(eps)
        self.negative_slope = negative_slope

        Cout, Cin, KH, KW = conv_weight_oihw.shape
        _, _, H, W = coarsest_input_nchw.shape
        self.OH, self.OW, self.Cout = H - KH + 1, W - KW + 1, Cout
        act_dtype = coarsest_input_nchw.dtype

        # One-time "buffer / parameter registration": im2col the fixed input
        # and pack weights/BN params in kernel layout.  The forward path never
        # touches NCHW layouts or repeats the im2col.
        x_nhwc = jnp.transpose(coarsest_input_nchw, (0, 2, 3, 1))
        self.patches = _im2col(x_nhwc, KH, KW)           # (OH*OW, KH*KW*Cin)
        self.w_packed, self.gamma_pad, self.beta_pad = _pack_params(
            conv_weight_oihw, bn_gamma, bn_beta, dtype=act_dtype)
        # conv bias intentionally dropped: a per-channel constant added before
        # training-mode BatchNorm is cancelled exactly by the mean subtraction.
        del conv_bias

    def forward(self, z_input=None, num_samples=1):
        if z_input is not None:
            # TODO(synk): the SGNet view's z-noise injection path is not part of
            # the spec; only the default z_input=None call is implemented.
            raise NotImplementedError("z_input injection is not implemented")
        # All expanded samples are identical and BatchNorm statistics over
        # identical samples equal the single-sample statistics, so the fused
        # conv/BN/act runs exactly ONCE; the batch dimension is expanded
        # afterwards (the Pallas analogue of torch's `.expand`).
        out1 = fused_conv_bn_act(
            self.patches, self.w_packed, self.gamma_pad, self.beta_pad,
            nu=1, OH=self.OH, OW=self.OW, Cout=self.Cout,
            eps=self.eps, negative_slope=self.negative_slope)
        return jnp.broadcast_to(out1, (int(num_samples),) + out1.shape[1:])

    __call__ = forward


# ----------------------------------------------------------------------------
# Pure-JAX reference (mirrors PyTorch: Conv2d WITH bias + BN(train) + act)
# ----------------------------------------------------------------------------
def _reference(x_nchw, weight_oihw, bias, gamma, beta, *,
               eps=1e-5, negative_slope=None):
    y = lax.conv_general_dilated(
        x_nchw.astype(jnp.float32), weight_oihw.astype(jnp.float32),
        window_strides=(1, 1), padding="VALID",
        dimension_numbers=("NCHW", "OIHW", "NCHW"),
        precision=lax.Precision.HIGHEST)
    y = y + bias.reshape(1, -1, 1, 1)
    m = jnp.mean(y, axis=(0, 2, 3), keepdims=True)
    v = jnp.mean((y - m) ** 2, axis=(0, 2, 3), keepdims=True)      # biased
    y = (y - m) * lax.rsqrt(v + eps) * gamma.reshape(1, -1, 1, 1) \
        + beta.reshape(1, -1, 1, 1)
    if negative_slope is not None:
        y = jnp.where(y >= 0, y, negative_slope * y)
    return y


if __name__ == "__main__":
    Cin, H, W = 4, 16, 16
    Cout, K = 8, 3
    num_samples = 2
    neg_slope = 0.2

    key = jax.random.PRNGKey(0)
    kx, kw_, kb, kg, kbe, kx2 = jax.random.split(key, 6)
    coarsest_input = jax.random.normal(kx, (1, Cin, H, W), jnp.float32)
    weight = jax.random.normal(kw_, (Cout, Cin, K, K), jnp.float32) * 0.1
    bias = jax.random.normal(kb, (Cout,), jnp.float32) * 0.1
    gamma = 1.0 + 0.1 * jax.random.normal(kg, (Cout,), jnp.float32)
    beta = 0.1 * jax.random.normal(kbe, (Cout,), jnp.float32)

    # Fixed-input view: `.expand(num_samples, ...)` handled by compute-once +
    # broadcast in the wrapper.
    view = FixedInputSGGenViewPallas(weight, bias, gamma, beta, coarsest_input,
                                     negative_slope=neg_slope)
    out = jax.block_until_ready(view(num_samples=num_samples))

    OH, OW = H - K + 1, W - K + 1
    assert out.shape == (num_samples, Cout, OH, OW)
    x_expanded = jnp.broadcast_to(coarsest_input, (num_samples, Cin, H, W))
    ref = _reference(x_expanded, weight, bias, gamma, beta,
                     negative_slope=neg_slope)
    assert jnp.allclose(out, ref, atol=1e-4, rtol=1e-4), "fixed-input mismatch"

    # Also exercise the generic distinct-batch path through the same kernel.
    x2 = jax.random.normal(kx2, (2, Cin, H, W), jnp.float32)
    out2 = jax.block_until_ready(
        conv_bn_act_nchw(x2, weight, bias, gamma, beta,
                         negative_slope=neg_slope))
    ref2 = _reference(x2, weight, bias, gamma, beta, negative_slope=neg_slope)
    assert jnp.allclose(out2, ref2, atol=1e-4, rtol=1e-4), "generic mismatch"

    print("KERNEL_OK")
</pallas_src>

<mosaic_0001>
module attributes {stable_mosaic.version = 11 : i64} {
  func.func @_fused_conv_bn_act_kernel(%arg0: memref<196x36xf32, #tpu.memory_space<vmem>>, %arg1: memref<36x128xf32, #tpu.memory_space<vmem>>, %arg2: memref<1x128xf32, #tpu.memory_space<vmem>>, %arg3: memref<1x128xf32, #tpu.memory_space<vmem>>, %arg4: memref<196x128xf32, #tpu.memory_space<vmem>>) attributes {dimension_semantics = [], scalar_prefetch = 0 : i64, scratch_operands = 0 : i64, tpu.core_type = #tpu.core_type<tc>} {
    %c0 = arith.constant 0 : index
    %c0_0 = arith.constant 0 : index
    %0 = vector.load %arg0[%c0, %c0_0] : memref<196x36xf32, #tpu.memory_space<vmem>>, vector<196x36xf32>
    %c0_1 = arith.constant 0 : index
    %c0_2 = arith.constant 0 : index
    %1 = vector.load %arg1[%c0_1, %c0_2] : memref<36x128xf32, #tpu.memory_space<vmem>>, vector<36x128xf32>
    %cst = arith.constant dense<0.000000e+00> : vector<196x128xf32>
    %2 = tpu.matmul %0, %1, %cst {dimension_numbers = #tpu.dot_dimension_numbers<[1], [0], [0], [1], [0, 0, 1, 1], [], []>} : vector<196x36xf32>, vector<36x128xf32>, vector<196x128xf32> -> vector<196x128xf32>
    %cst_3 = arith.constant dense<0.000000e+00> : vector<128xf32>
    %3 = vector.multi_reduction <add>, %2, %cst_3 [0] : vector<196x128xf32> to vector<128xf32>
    %4 = vector.shape_cast %3 : vector<128xf32> to vector<1x128xf32>
    %cst_4 = arith.constant 0.00510204071 : f32
    %5 = vector.broadcast %cst_4 : f32 to vector<1x128xf32>
    %6 = arith.mulf %4, %5 : vector<1x128xf32>
    %7 = vector.broadcast %6 : vector<1x128xf32> to vector<196x128xf32>
    %8 = arith.subf %2, %7 : vector<196x128xf32>
    %9 = arith.mulf %8, %8 : vector<196x128xf32>
    %cst_5 = arith.constant dense<0.000000e+00> : vector<128xf32>
    %10 = vector.multi_reduction <add>, %9, %cst_5 [0] : vector<196x128xf32> to vector<128xf32>
    %11 = vector.shape_cast %10 : vector<128xf32> to vector<1x128xf32>
    %cst_6 = arith.constant 0.00510204071 : f32
    %12 = vector.broadcast %cst_6 : f32 to vector<1x128xf32>
    %13 = arith.mulf %11, %12 : vector<1x128xf32>
    %cst_7 = arith.constant 9.99999974E-6 : f32
    %14 = vector.broadcast %cst_7 : f32 to vector<1x128xf32>
    %15 = arith.addf %13, %14 : vector<1x128xf32>
    %16 = math.rsqrt %15 : vector<1x128xf32>
    %c0_8 = arith.constant 0 : index
    %c0_9 = arith.constant 0 : index
    %17 = vector.load %arg2[%c0_8, %c0_9] : memref<1x128xf32, #tpu.memory_space<vmem>>, vector<1x128xf32>
    %18 = arith.mulf %17, %16 : vector<1x128xf32>
    %c0_10 = arith.constant 0 : index
    %c0_11 = arith.constant 0 : index
    %19 = vector.load %arg3[%c0_10, %c0_11] : memref<1x128xf32, #tpu.memory_space<vmem>>, vector<1x128xf32>
    %20 = arith.mulf %6, %18 : vector<1x128xf32>
    %21 = arith.subf %19, %20 : vector<1x128xf32>
    %22 = vector.broadcast %18 : vector<1x128xf32> to vector<196x128xf32>
    %23 = arith.mulf %2, %22 : vector<196x128xf32>
    %24 = vector.broadcast %21 : vector<1x128xf32> to vector<196x128xf32>
    %25 = arith.addf %23, %24 : vector<196x128xf32>
    %cst_12 = arith.constant 0.000000e+00 : f32
    %26 = vector.broadcast %cst_12 : f32 to vector<196x128xf32>
    %27 = arith.cmpf oge, %25, %26 : vector<196x128xf32>
    %cst_13 = arith.constant 2.000000e-01 : f32
    %28 = vector.broadcast %cst_13 : f32 to vector<196x128xf32>
    %29 = arith.mulf %28, %25 : vector<196x128xf32>
    %30 = arith.select %27, %25, %29 : vector<196x128xi1>, vector<196x128xf32>
    %c0_14 = arith.constant 0 : index
    %c0_15 = arith.constant 0 : index
    %31 = vector.load %arg4[%c0_14, %c0_15] : memref<196x128xf32, #tpu.memory_space<vmem>>, vector<196x128xf32>
    tpu.vector_store %arg4[%c0_14, %c0_15], %30 {strides = array<i32>} : memref<196x128xf32, #tpu.memory_space<vmem>>, vector<196x128xf32>,
    return
  }
}

</mosaic_0001>

<bundles_post_ra>
// kernel: tpu_custom_call.1
= control target key start
LH: loop header
LB: loop body
LE: loop exit
PB: predicated region body
PF: predicated region fallthrough
CT: control target
= control target key end

     0   :  { %v802_v3 = vmov 0.0|0.0   ;;  %vm803_vm0 = vmmov 0   ;;  %v804_v6 = vmov 0.0   ;;  %vm124_vm1 = vcmask 1043456   ;;  %s1347_s0 = inlined_call_operand.vmem [shape: f32[196,36], index: 0, kind: input, shape index: {}]   ;;  %s1348_s1 = inlined_call_operand.vmem [shape: f32[36,128], index: 1, kind: input, shape index: {}]   ;;  %s1349_s2 = inlined_call_operand.vmem [shape: f32[1,128], index: 2, kind: input, shape index: {}]   ;;  %s1350_s3 = inlined_call_operand.vmem [shape: f32[1,128], index: 3, kind: input, shape index: {}]   ;;  %s1351_s4 = inlined_call_operand.hbm [shape: f32[196,128], index: 4, kind: output, shape index: {}]  }
   0x1   :  { %v43_v0 = vld [vmem:[%s1348_s1] sm:$0xff]  ;;  %v44_v1 = vld [vmem:[%s1348_s1 + $0x8] sm:$0xff]  ;;  %v45_v2 = vld [vmem:[%s1348_s1 + $0x10] sm:$0xff]  ;;  %758 = vmatprep.subr.bf16.mxu0 %v802_v3  ;;  %764 = vmatprep.subr.bf16.mxu1 %v802_v3  ;;  %vm48_vm2 = vcmask 293888  }
   0x2   :  { %v759_v4 = vpack.c.bf16 %v44_v1, %v43_v0  ;;  %v46_v5 = vld [vmem:[%s1348_s1 + $0x18] sm:$0xff]  ;;  %683 = vmatprep.mubr.msk.f32.mxu0 %vm803_vm0, %v804_v6  ;;  %722 = vmatprep.mubr.msk.f32.mxu1 %vm803_vm0, %v804_v6  ;;  %v47_v8 = vld [vmem:[%s1348_s1 + $0x20] sm:$0xf]  ;;  %v31_v10 = vld [vmem:[%s1347_s0 + $0x68] sm:$0xff] }
   0x3   :  { %v762_v7 = vpack.c.bf16 %v46_v5, %v45_v2  ;;  %v18_v9 = vld [vmem:[%s1347_s0] sm:$0xff] }
   0x4   :  { %760 = vmatpush3.bf16.msra.mxu0 %v759_v4  ;;  %767 = vmatpush3.bf16.msra.mxu1 %v759_v4 }
   0x5   :  { %761 = vmatprep.subr.bf16.mxu0 %v802_v3  ;;  %765 = vmatprep.subr.bf16.mxu1 %v802_v3 }
   0x8   :  { %763 = vmatpush3.bf16.msra.mxu0 %v762_v7  ;;  %768 = vmatpush3.bf16.msra.mxu1 %v762_v7 }
   0x9   :  { %681 = vmatprep.subr.mxu0 %v804_v6  ;;  %766 = vmatprep.subr.mxu1 %v804_v6 }
   0xa   :  { %9 = vsyncpa [#allocation3], 0  ;;  %v19_v11 = vld [vmem:[%s1347_s0 + $0x8] sm:$0xff]  ;;  %v32_v12 = vld [vmem:[%s1347_s0 + $0x70] sm:$0xff] }
   0xb   :  { %v20_v13 = vld [vmem:[%s1347_s0 + $0x10] sm:$0xff]  ;;  %v33_v14 = vld [vmem:[%s1347_s0 + $0x78] sm:$0xff]  ;;  %v34_v16 = vld [vmem:[%s1347_s0 + $0x80] sm:$0xff] }
   0xc   :  { %682 = vmatpush3.msk.msra.mxu0 %vm124_vm1, %v47_v8  ;;  %769 = vmatpush3.msk.msra.mxu1 %vm124_vm1, %v47_v8  ;;  %v21_v15 = vld [vmem:[%s1347_s0 + $0x18] sm:$0xff]  ;;  %v22_v17 = vld [vmem:[%s1347_s0 + $0x20] sm:$0xff]  ;;  %v35_v18 = vld [vmem:[%s1347_s0 + $0x88] sm:$0xff] }
   0xd   :  { %684 = vmatmul.mubr.msk.f32.vlgmr.msra.gmra.mrb[0].mxu0 %vm48_vm2, %v18_v9  ;;  %723 = vmatmul.mubr.msk.f32.vlgmr.msra.gmra.mrb[0].mxu1 %vm48_vm2, %v31_v10  ;;  %v23_v19 = vld [vmem:[%s1347_s0 + $0x28] sm:$0xff]  ;;  %v36_v20 = vld [vmem:[%s1347_s0 + $0x90] sm:$0xff]  ;;  %v37_v22 = vld [vmem:[%s1347_s0 + $0x98] sm:$0xff] }
   0xe   :  { %686 = vmatprep.mubr.msk.f32.mxu0 %vm803_vm0, %v804_v6  ;;  %725 = vmatprep.mubr.msk.f32.mxu1 %vm803_vm0, %v804_v6  ;;  %v24_v21 = vld [vmem:[%s1347_s0 + $0x30] sm:$0xff]  ;;  %v25_v23 = vld [vmem:[%s1347_s0 + $0x38] sm:$0xff]  ;;  %v38_v24 = vld [vmem:[%s1347_s0 + $0xa0] sm:$0xff] }
   0xf   :  { %v26_v25 = vld [vmem:[%s1347_s0 + $0x40] sm:$0xff]  ;;  %v39_v26 = vld [vmem:[%s1347_s0 + $0xa8] sm:$0xff]  ;;  %v40_v28 = vld [vmem:[%s1347_s0 + $0xb0] sm:$0xff] }
  0x10   :  { %v27_v27 = vld [vmem:[%s1347_s0 + $0x48] sm:$0xff]  ;;  %v28_v29 = vld [vmem:[%s1347_s0 + $0x50] sm:$0xff]  ;;  %v41_v30 = vld [vmem:[%s1347_s0 + $0xb8] sm:$0xff] }
  0x11   :  { %687 = vmatmul.mubr.msk.f32.gmra.mrb[2].mxu0 %vm48_vm2, %v19_v11  ;;  %726 = vmatmul.mubr.msk.f32.gmra.mrb[2].mxu1 %vm48_vm2, %v32_v12  ;;  %v29_v31 = vld [vmem:[%s1347_s0 + $0x58] sm:$0xff]  ;;  %v42_v32 = vld [vmem:[%s1347_s0 + $0xc0] sm:$0xf] }
  0x12   :  { %689 = vmatprep.mubr.msk.f32.mxu0 %vm803_vm0, %v804_v6  ;;  %728 = vmatprep.mubr.msk.f32.mxu1 %vm803_vm0, %v804_v6  ;;  %v30_v33 = vld [vmem:[%s1347_s0 + $0x60] sm:$0xff] }
  0x15   :  { %690 = vmatmul.mubr.msk.f32.gmra.mrb[4].mxu0 %vm48_vm2, %v20_v13  ;;  %729 = vmatmul.mubr.msk.f32.gmra.mrb[4].mxu1 %vm48_vm2, %v33_v14 }
  0x16   :  { %692 = vmatprep.mubr.msk.f32.mxu0 %vm803_vm0, %v804_v6  ;;  %731 = vmatprep.mubr.msk.f32.mxu1 %vm803_vm0, %v804_v6 }
  0x19   :  { %693 = vmatmul.mubr.msk.f32.gmra.mrb[6].mxu0 %vm48_vm2, %v21_v15  ;;  %732 = vmatmul.mubr.msk.f32.gmra.mrb[6].mxu1 %vm48_vm2, %v34_v16 }
  0x1a   :  { %695 = vmatprep.mubr.msk.f32.mxu0 %vm803_vm0, %v804_v6  ;;  %734 = vmatprep.mubr.msk.f32.mxu1 %vm803_vm0, %v804_v6 }
  0x1d   :  { %696 = vmatmul.mubr.msk.f32.gmra.mrb[8].mxu0 %vm48_vm2, %v22_v17  ;;  %735 = vmatmul.mubr.msk.f32.gmra.mrb[8].mxu1 %vm48_vm2, %v35_v18 }
  0x1e   :  { %698 = vmatprep.mubr.msk.f32.mxu0 %vm803_vm0, %v804_v6  ;;  %737 = vmatprep.mubr.msk.f32.mxu1 %vm803_vm0, %v804_v6 }
  0x21   :  { %699 = vmatmul.mubr.msk.f32.gmra.mrb[10].mxu0 %vm48_vm2, %v23_v19  ;;  %738 = vmatmul.mubr.msk.f32.gmra.mrb[10].mxu1 %vm48_vm2, %v36_v20 }
  0x22   :  { %701 = vmatprep.mubr.msk.f32.mxu0 %vm803_vm0, %v804_v6  ;;  %740 = vmatprep.mubr.msk.f32.mxu1 %vm803_vm0, %v804_v6 }
  0x25   :  { %702 = vmatmul.mubr.msk.f32.gmra.mrb[12].mxu0 %vm48_vm2, %v24_v21  ;;  %741 = vmatmul.mubr.msk.f32.gmra.mrb[12].mxu1 %vm48_vm2, %v37_v22 }
  0x26   :  { %704 = vmatprep.mubr.msk.f32.mxu0 %vm803_vm0, %v804_v6  ;;  %743 = vmatprep.mubr.msk.f32.mxu1 %vm803_vm0, %v804_v6 }
  0x29   :  { %705 = vmatmul.mubr.msk.f32.gmra.mrb[14].mxu0 %vm48_vm2, %v25_v23  ;;  %744 = vmatmul.mubr.msk.f32.gmra.mrb[14].mxu1 %vm48_vm2, %v38_v24 }
  0x2a   :  { %707 = vmatprep.mubr.msk.f32.mxu0 %vm803_vm0, %v804_v6  ;;  %746 = vmatprep.mubr.msk.f32.mxu1 %vm803_vm0, %v804_v6 }
  0x2d   :  { %708 = vmatmul.mubr.msk.f32.gmra.mrb[16].mxu0 %vm48_vm2, %v26_v25  ;;  %747 = vmatmul.mubr.msk.f32.gmra.mrb[16].mxu1 %vm48_vm2, %v39_v26 }
  0x2e   :  { %710 = vmatprep.mubr.msk.f32.mxu0 %vm803_vm0, %v804_v6  ;;  %749 = vmatprep.mubr.msk.f32.mxu1 %vm803_vm0, %v804_v6 }
  0x31   :  { %711 = vmatmul.mubr.msk.f32.gmra.mrb[18].mxu0 %vm48_vm2, %v27_v27  ;;  %750 = vmatmul.mubr.msk.f32.gmra.mrb[18].mxu1 %vm48_vm2, %v40_v28 }
  0x32   :  { %713 = vmatprep.mubr.msk.f32.mxu0 %vm803_vm0, %v804_v6  ;;  %752 = vmatprep.mubr.msk.f32.mxu1 %vm803_vm0, %v804_v6 }
  0x35   :  { %714 = vmatmul.mubr.msk.f32.gmra.mrb[20].mxu0 %vm48_vm2, %v28_v29  ;;  %753 = vmatmul.mubr.msk.f32.gmra.mrb[20].mxu1 %vm48_vm2, %v41_v30 }
  0x36   :  { %716 = vmatprep.mubr.msk.f32.mxu0 %vm803_vm0, %v804_v6  ;;  %755 = vmatprep.mubr.msk.f32.mxu1 %vm803_vm0, %v804_v6 }
  0x39   :  { %717 = vmatmul.mubr.msk.f32.gmra.mrb[22].mxu0 %vm48_vm2, %v29_v31  ;;  %756 = vmatmul.mubr.msk.f32.gmra.mrb[22].mxu1 %vm48_vm2, %v42_v32 }
  0x3a   :  { %719 = vmatprep.mubr.msk.f32.mxu0 %vm803_vm0, %v804_v6 }
  0x3d   :  { %720 = vmatmul.mubr.msk.f32.gmra.mrb[24].mxu0 %vm48_vm2, %v30_v33 }
  0xe0   :  { %v1002_v34 = vpop.f32.mrb[0].mxu0  ;;  %v1004_v35 = vpop.f32.mrb[0].mxu1 }
  0xe1   :  { %v685_v36 = vpop.f32.mrb[1].mxu0  ;;  %v724_v37 = vpop.f32.mrb[1].mxu1 }
  0xe4   :  { %v1006_v38 = vpop.f32.mrb[2].mxu0  ;;  %v1008_v39 = vpop.f32.mrb[2].mxu1 }
  0xe5   :  { %v318_v40 = vadd.f32 %v1006_v38, %v1002_v34  ;;  %v688_v41 = vpop.f32.mrb[3].mxu0  ;;  %v727_v42 = vpop.f32.mrb[3].mxu1 }
  0xe8   :  { %v1012_v43 = vpop.f32.mrb[4].mxu0  ;;  %v1014_v44 = vpop.f32.mrb[4].mxu1 }
  0xe9   :  { %v319_v45 = vadd.f32 %v318_v40, %v1012_v43  ;;  %v691_v46 = vpop.f32.mrb[5].mxu0  ;;  %v730_v47 = vpop.f32.mrb[5].mxu1 }
  0xec   :  { %v1017_v48 = vpop.f32.mrb[6].mxu0  ;;  %v1019_v49 = vpop.f32.mrb[6].mxu1 }
  0xed   :  { %v320_v50 = vadd.f32 %v319_v45, %v1017_v48  ;;  %v694_v51 = vpop.f32.mrb[7].mxu0  ;;  %v733_v52 = vpop.f32.mrb[7].mxu1 }
  0xf0   :  { %v1022_v53 = vpop.f32.mrb[8].mxu0  ;;  %v1024_v54 = vpop.f32.mrb[8].mxu1 }
  0xf1   :  { %v321_v55 = vadd.f32 %v320_v50, %v1022_v53  ;;  %v697_v56 = vpop.f32.mrb[9].mxu0  ;;  %v736_v57 = vpop.f32.mrb[9].mxu1 }
  0xf4   :  { %v1027_v58 = vpop.f32.mrb[10].mxu0  ;;  %v1029_v59 = vpop.f32.mrb[10].mxu1 }
  0xf5   :  { %v322_v60 = vadd.f32 %v321_v55, %v1027_v58  ;;  %v700_v61 = vpop.f32.mrb[11].mxu0  ;;  %v739_v62 = vpop.f32.mrb[11].mxu1 }
  0xf8   :  { %v1032_v63 = vpop.f32.mrb[12].mxu0  ;;  %v1034_v0 = vpop.f32.mrb[12].mxu1 }
  0xf9   :  { %v323_v1 = vadd.f32 %v322_v60, %v1032_v63  ;;  %v703_v2 = vpop.f32.mrb[13].mxu0  ;;  %v742_v3 = vpop.f32.mrb[13].mxu1 }
  0xfc   :  { %v1037_v4 = vpop.f32.mrb[14].mxu0  ;;  %v1039_v5 = vpop.f32.mrb[14].mxu1 }
  0xfd   :  { %v324_v6 = vadd.f32 %v323_v1, %v1037_v4  ;;  %v706_v7 = vpop.f32.mrb[15].mxu0  ;;  %v745_v8 = vpop.f32.mrb[15].mxu1 }
 0x100   :  { %v1042_v9 = vpop.f32.mrb[16].mxu0  ;;  %v1044_v10 = vpop.f32.mrb[16].mxu1 }
 0x101   :  { %v325_v11 = vadd.f32 %v324_v6, %v1042_v9  ;;  %v709_v12 = vpop.f32.mrb[17].mxu0  ;;  %v748_v13 = vpop.f32.mrb[17].mxu1 }
 0x104   :  { %v1047_v14 = vpop.f32.mrb[18].mxu0  ;;  %v1049_v15 = vpop.f32.mrb[18].mxu1 }
 0x105   :  { %v326_v16 = vadd.f32 %v325_v11, %v1047_v14  ;;  %v712_v17 = vpop.f32.mrb[19].mxu0  ;;  %v751_v18 = vpop.f32.mrb[19].mxu1 }
 0x108   :  { %v1052_v19 = vpop.f32.mrb[20].mxu0  ;;  %v1054_v20 = vpop.f32.mrb[20].mxu1 }
 0x109   :  { %v327_v21 = vadd.f32 %v326_v16, %v1052_v19  ;;  %v715_v22 = vpop.f32.mrb[21].mxu0  ;;  %v754_v23 = vpop.f32.mrb[21].mxu1 }
 0x10c   :  { %v1057_v24 = vpop.f32.mrb[22].mxu0  ;;  %v1059_v25 = vpop.f32.mrb[22].mxu1 }
 0x10d   :  { %v328_v26 = vadd.f32 %v327_v21, %v1057_v24  ;;  %v718_v27 = vpop.f32.mrb[23].mxu0  ;;  %v757_v28 = vpop.f32.mrb[23].mxu1  ;;  %v341_v50 = vsel %vm124_vm1, %v1059_v25, 0.0 }
 0x110   :  { %v1062_v29 = vpop.f32.mrb[24].mxu0 }
 0x111   :  { %v329_v30 = vadd.f32 %v328_v26, %v1062_v29  ;;  %v721_v31 = vpop.f32.mrb[25].mxu0 }
 0x113   :  { %v330_v32 = vadd.f32 %v329_v30, %v1004_v35 }
 0x115   :  { %v331_v33 = vadd.f32 %v330_v32, %v1008_v39 }
 0x117   :  { %v332_v36 = vadd.f32 %v331_v33, %v1014_v44 }
 0x119   :  { %v333_v37 = vadd.f32 %v332_v36, %v1019_v49 }
 0x11b   :  { %v334_v40 = vadd.f32 %v333_v37, %v1024_v54 }
 0x11d   :  { %v335_v41 = vadd.f32 %v334_v40, %v1029_v59 }
 0x11f   :  { %v336_v42 = vadd.f32 %v335_v41, %v1034_v0 }
 0x121   :  { %v337_v45 = vadd.f32 %v336_v42, %v1039_v5 }
 0x123   :  { %v338_v46 = vadd.f32 %v337_v45, %v1044_v10 }
 0x125   :  { %v339_v47 = vadd.f32 %v338_v46, %v1049_v15 }
 0x127   :  { %v340_v51 = vadd.f32 %v339_v47, %v1054_v20 }
 0x129   :  { %v342_v52 = vadd.f32 %v341_v50, %v340_v51 }
 0x12b   :  { %v343_v55 = vrot.slane %v342_v52, 4 }
 0x12d   :  { %v344_v56 = vadd.f32 %v343_v55, %v342_v52 }
 0x12f   :  { %v345_v57 = vrot.slane %v344_v56, 2 }
 0x131   :  { %v346_v60 = vadd.f32 %v345_v57, %v344_v56 }
 0x133   :  { %v347_v61 = vrot.slane %v346_v60, 1 }
 0x135   :  { %v348_v62 = vadd.f32 %v347_v61, %v346_v60 }
 0x137   :  { %v1078_v1 = vmul.f32 0.0051020407, %v348_v62 }
 0x139   :  { %v350_v2 = vsub.f32 %v1002_v34, %v1078_v1  ;;  %v351_v3 = vsub.f32 %v1006_v38, %v1078_v1  ;;  %v352_v6 = vsub.f32 %v1012_v43, %v1078_v1  ;;  %v353_v11 = vsub.f32 %v1017_v48, %v1078_v1 }
 0x13a   :  { %v354_v12 = vsub.f32 %v1022_v53, %v1078_v1  ;;  %v355_v17 = vsub.f32 %v1027_v58, %v1078_v1  ;;  %v356_v22 = vsub.f32 %v1032_v63, %v1078_v1  ;;  %v357_v27 = vsub.f32 %v1037_v4, %v1078_v1 }
 0x13b   :  { %v375_v7 = vmul.f32 %v350_v2, %v350_v2  ;;  %v376_v8 = vmul.f32 %v351_v3, %v351_v3  ;;  %v377_v13 = vmul.f32 %v352_v6, %v352_v6  ;;  %v378_v18 = vmul.f32 %v353_v11, %v353_v11 }
 0x13c   :  { %v379_v23 = vmul.f32 %v354_v12, %v354_v12  ;;  %v380_v28 = vmul.f32 %v355_v17, %v355_v17  ;;  %v358_v31 = vsub.f32 %v1042_v9, %v1078_v1  ;;  %v381_v32 = vmul.f32 %v356_v22, %v356_v22 }
 0x13d   :  { %v400_v16 = vadd.f32 %v376_v8, %v375_v7  ;;  %v359_v36 = vsub.f32 %v1047_v14, %v1078_v1  ;;  %v382_v37 = vmul.f32 %v357_v27, %v357_v27  ;;  %v360_v41 = vsub.f32 %v1052_v19, %v1078_v1 }
 0x13e   :  { %v383_v42 = vmul.f32 %v358_v31, %v358_v31  ;;  %v361_v46 = vsub.f32 %v1057_v24, %v1078_v1  ;;  %v362_v51 = vsub.f32 %v1062_v29, %v1078_v1  ;;  %v363_v56 = vsub.f32 %v1004_v35, %v1078_v1 }
 0x13f   :  { %v401_v21 = vadd.f32 %v400_v16, %v377_v13  ;;  %v384_v47 = vmul.f32 %v359_v36, %v359_v36  ;;  %v385_v52 = vmul.f32 %v360_v41, %v360_v41  ;;  %v364_v61 = vsub.f32 %v1008_v39, %v1078_v1 }
 0x140   :  { %v386_v57 = vmul.f32 %v361_v46, %v361_v46  ;;  %v387_v62 = vmul.f32 %v362_v51, %v362_v51  ;;  %v365_v3 = vsub.f32 %v1014_v44, %v1078_v1  ;;  %v388_v6 = vmul.f32 %v363_v56, %v363_v56 }
 0x141   :  { %v402_v26 = vadd.f32 %v401_v21, %v378_v18  ;;  %v366_v8 = vsub.f32 %v1019_v49, %v1078_v1  ;;  %v389_v11 = vmul.f32 %v364_v61, %v364_v61  ;;  %v367_v13 = vsub.f32 %v1024_v54, %v1078_v1 }
 0x142   :  { %v390_v16 = vmul.f32 %v365_v3, %v365_v3  ;;  %v368_v18 = vsub.f32 %v1029_v59, %v1078_v1 }
 0x143   :  { %v403_v30 = vadd.f32 %v402_v26, %v379_v23  ;;  %v391_v21 = vmul.f32 %v366_v8, %v366_v8  ;;  %v369_v23 = vsub.f32 %v1034_v0, %v1078_v1  ;;  %v392_v26 = vmul.f32 %v367_v13, %v367_v13 }
 0x144   :  { %v440_v13 = vlaneseq }
 0x145   :  { %v404_v33 = vadd.f32 %v403_v30, %v380_v28  ;;  %v370_v28 = vsub.f32 %v1039_v5, %v1078_v1  ;;  %v393_v30 = vmul.f32 %v368_v18, %v368_v18 }
 0x147   :  { %v405_v40 = vadd.f32 %v404_v33, %v381_v32  ;;  %v371_v32 = vsub.f32 %v1044_v10, %v1078_v1  ;;  %v394_v33 = vmul.f32 %v369_v23, %v369_v23  ;;  %v436_v23 = vld [vmem:[%s1350_s3] sm:$0x1] }
 0x149   :  { %v406_v45 = vadd.f32 %v405_v40, %v382_v37  ;;  %v372_v37 = vsub.f32 %v1049_v15, %v1078_v1  ;;  %v395_v40 = vmul.f32 %v370_v28, %v370_v28  ;;  %v396_v46 = vmul.f32 %v371_v32, %v371_v32 }
 0x14b   :  { %v407_v50 = vadd.f32 %v406_v45, %v383_v42  ;;  %v374_v42 = vsub.f32 %v1059_v25, %v1078_v1  ;;  %v373_v45 = vsub.f32 %v1054_v20, %v1078_v1 }
 0x14d   :  { %v408_v55 = vadd.f32 %v407_v50, %v384_v47  ;;  %v397_v50 = vmul.f32 %v372_v37, %v372_v37 }
 0x14f   :  { %v409_v60 = vadd.f32 %v408_v55, %v385_v52  ;;  %v399_v52 = vmul.f32 %v374_v42, %v374_v42  ;;  %v398_v55 = vmul.f32 %v373_v45, %v373_v45 }
 0x151   :  { %v410_v2 = vadd.f32 %v409_v60, %v386_v57  ;;  %v423_v60 = vsel %vm124_vm1, %v399_v52, 0.0 }
 0x153   :  { %v411_v7 = vadd.f32 %v410_v2, %v387_v62 }
 0x155   :  { %v412_v12 = vadd.f32 %v411_v7, %v388_v6 }
 0x157   :  { %v413_v17 = vadd.f32 %v412_v12, %v389_v11 }
 0x159   :  { %v414_v22 = vadd.f32 %v413_v17, %v390_v16  ;;  %v441_v16 = vshrl.u32 %v440_v13, 7  ;;  %v434_v17 = vld [vmem:[%s1349_s2] sm:$0x1]  ;;  %s805_s2 = smov [#allocation2]  }
 0x15a   :  { %s1228_s3 = sshll.u32 %s805_s2, 4  ;;  %s1304_s3 = int_to_ptr.vmem [resolvable:$true] %s1228_s3 }
 0x15b   :  { %v415_v27 = vadd.f32 %v414_v22, %v391_v21  ;;  %v442_v18 = vsub.s32 0, %v441_v16  ;;  %s778_s24 = scalar_lea.vmem %s1304_s3, 3200  ;;  %p783_p1 = scmp.lt.s32.totalorder %s1304_s3, %s1304_s3 }
 0x15c   :  { %p779_p0 = scmp.ne.s32.totalorder %s1304_s3, %s778_s24  ;;  %p784_p2 = scmp.lt.s32.totalorder %s778_s24, %s778_s24 }
 0x15d   :  { %v416_v31 = vadd.f32 %v415_v27, %v392_v26 }
 0x15e   :  { %p785_p3 = por %p784_p2, %p783_p1 }
 0x15f   :  { %v417_v36 = vadd.f32 %v416_v31, %v393_v30 }
 0x160   :  { %p786_p4 = pnand %p785_p3, %p779_p0 }
 0x161   :  { %v418_v41 = vadd.f32 %v417_v36, %v394_v33 }
 0x163   :  { %v419_v47 = vadd.f32 %v418_v41, %v395_v40 }
 0x165   :  { %v420_v51 = vadd.f32 %v419_v47, %v396_v46 }
 0x167   :  { %v421_v56 = vadd.f32 %v420_v51, %v397_v50 }
 0x169   :  { %v422_v57 = vadd.f32 %v421_v56, %v398_v55 }
 0x16b   :  { %v424_v61 = vadd.f32 %v423_v60, %v422_v57 }
 0x16d   :  { %v425_v62 = vrot.slane %v424_v61, 4 }
 0x16f   :  { %v426_v2 = vadd.f32 %v425_v62, %v424_v61 }
 0x171   :  { %v427_v3 = vrot.slane %v426_v2, 2 }
 0x173   :  { %v428_v6 = vadd.f32 %v427_v3, %v426_v2 }
 0x175   :  { %v429_v7 = vrot.slane %v428_v6, 1 }
 0x177   :  { %v430_v8 = vadd.f32 %v429_v7, %v428_v6 }
 0x179   :  { %v431_v11 = vmul.f32 0.0051020407, %v430_v8 }
 0x17b   :  { %v432_v12 = vadd.f32 1e-05, %v431_v11 }
 0x17d   :  { %776 = vrsqrt.f32 %v432_v12 }
 0x187   :  { %v777_v21 = vpop.eup %776 }
 0x188   :  { %v435_v22 = vmul.f32 %v777_v21, %v434_v17 }
 0x18a   :  { %v437_v26 = vmul.f32 %v435_v22, %v1078_v1  ;;  %v443_v27 = vrot.slane %v435_v22, %v442_v18 }
 0x18c   :  { %v438_v28 = vsub.f32 %v436_v23, %v437_v26  ;;  %v469_v30 = vmul.f32 %v443_v27, %v1059_v25  ;;  %v445_v31 = vmul.f32 %v443_v27, %v1002_v34  ;;  %v446_v32 = vmul.f32 %v443_v27, %v1006_v38 }
 0x18d   :  { %v447_v33 = vmul.f32 %v443_v27, %v1012_v43  ;;  %v448_v36 = vmul.f32 %v443_v27, %v1017_v48  ;;  %v449_v37 = vmul.f32 %v443_v27, %v1022_v53  ;;  %v450_v40 = vmul.f32 %v443_v27, %v1027_v58 }
 0x18e   :  { %v474_v41 = vrot.slane %v438_v28, %v442_v18  ;;  %v451_v42 = vmul.f32 %v443_v27, %v1032_v63  ;;  %v452_v1 = vmul.f32 %v443_v27, %v1037_v4  ;;  %v453_v45 = vmul.f32 %v443_v27, %v1042_v9 }
 0x18f   :  { %v454_v25 = vmul.f32 %v443_v27, %v1047_v14  ;;  %v455_v34 = vmul.f32 %v443_v27, %v1052_v19  ;;  %v456_v38 = vmul.f32 %v443_v27, %v1057_v24  ;;  %v457_v43 = vmul.f32 %v443_v27, %v1062_v29 }
 0x190   :  { %v500_v48 = vadd.f32 %v474_v41, %v469_v30  ;;  %v458_v53 = vmul.f32 %v443_v27, %v1004_v35  ;;  %v459_v58 = vmul.f32 %v443_v27, %v1008_v39  ;;  %v460_v46 = vmul.f32 %v443_v27, %v1014_v44 }
 0x191   :  { %v461_v63 = vmul.f32 %v443_v27, %v1019_v49  ;;  %v462_v4 = vmul.f32 %v443_v27, %v1024_v54  ;;  %v463_v9 = vmul.f32 %v443_v27, %v1029_v59  ;;  %v464_v14 = vmul.f32 %v443_v27, %v1034_v0 }
 0x192   :  { %vm525_vm3 = vcmp.ge.f32.partialorder %v500_v48, 0.0  ;;  %v550_v19 = vmul.f32 0.2, %v500_v48  ;;  %v465_v24 = vmul.f32 %v443_v27, %v1039_v5  ;;  %v466_v29 = vmul.f32 %v443_v27, %v1044_v10 }
 0x193   :  { %v467_v35 = vmul.f32 %v443_v27, %v1049_v15  ;;  %v468_v39 = vmul.f32 %v443_v27, %v1054_v20  ;;  %v476_v47 = vadd.f32 %v474_v41, %v445_v31  ;;  %v1163_v44 = vadd.f32 %v474_v41, %v446_v32 }
 0x194   :  { %v575_v49 = vsel %vm525_vm3, %v500_v48, %v550_v19  ;;  %v1165_v50 = vadd.f32 %v474_v41, %v447_v33  ;;  %v1167_v54 = vadd.f32 %v474_v41, %v448_v36  ;;  %v1169_v59 = vadd.f32 %v474_v41, %v449_v37 }
 0x195   :  { %600 = vst [vmem:[#allocation2 + $0xc0] sm:$0xf] %v575_v49  ;;  %v1171_v0 = vadd.f32 %v474_v41, %v450_v40  ;;  %v1173_v5 = vadd.f32 %v474_v41, %v451_v42  ;;  %v1175_v10 = vadd.f32 %v474_v41, %v452_v1  ;;  %v1177_v15 = vadd.f32 %v474_v41, %v453_v45 }
 0x196   :  { %v1179_v20 = vadd.f32 %v474_v41, %v454_v25  ;;  %v1181_v51 = vadd.f32 %v474_v41, %v455_v34  ;;  %v1183_v52 = vadd.f32 %v474_v41, %v456_v38  ;;  %v1185_v55 = vadd.f32 %v474_v41, %v457_v43 }
 0x197   :  { %v1187_v56 = vadd.f32 %v474_v41, %v458_v53  ;;  %v1189_v57 = vadd.f32 %v474_v41, %v459_v58  ;;  %v1191_v60 = vadd.f32 %v474_v41, %v460_v46  ;;  %v1193_v61 = vadd.f32 %v474_v41, %v461_v63 }
 0x198   :  { %v1195_v62 = vadd.f32 %v474_v41, %v462_v4  ;;  %v1197_v2 = vadd.f32 %v474_v41, %v463_v9  ;;  %v1199_v3 = vadd.f32 %v474_v41, %v464_v14  ;;  %v1201_v6 = vadd.f32 %v474_v41, %v465_v24 }
 0x199   :  { %v1203_v7 = vadd.f32 %v474_v41, %v466_v29  ;;  %v1205_v8 = vadd.f32 %v474_v41, %v467_v35  ;;  %v1207_v11 = vadd.f32 %v474_v41, %v468_v39  ;;  %vm501_vm4 = vcmp.ge.f32.partialorder %v476_v47, 0.0 }
 0x19a   :  { %vm502_vm5 = vcmp.ge.f32.partialorder %v1163_v44, 0.0  ;;  %vm503_vm6 = vcmp.ge.f32.partialorder %v1165_v50, 0.0  ;;  %vm504_vm7 = vcmp.ge.f32.partialorder %v1167_v54, 0.0  ;;  %vm505_vm8 = vcmp.ge.f32.partialorder %v1169_v59, 0.0 }
 0x19b   :  { %vm506_vm9 = vcmp.ge.f32.partialorder %v1171_v0, 0.0  ;;  %vm511_vm14 = vcmp.ge.f32.partialorder %v1181_v51, 0.0  ;;  %vm512_vm15 = vcmp.ge.f32.partialorder %v1183_v52, 0.0  ;;  %vm517_vm10 = vcmp.ge.f32.partialorder %v1193_v61, 0.0 }
 0x19c   :  { %vm518_vm11 = vcmp.ge.f32.partialorder %v1195_v62, 0.0  ;;  %vm519_vm12 = vcmp.ge.f32.partialorder %v1197_v2, 0.0  ;;  %vm520_vm13 = vcmp.ge.f32.partialorder %v1199_v3, 0.0  ;;  %v526_v12 = vmul.f32 0.2, %v476_v47 }
 0x19d   :  { %vm521_vm0 = vcmp.ge.f32.partialorder %v1201_v6, 0.0  ;;  %vm522_vm1 = vcmp.ge.f32.partialorder %v1203_v7, 0.0  ;;  %vm523_vm2 = vcmp.ge.f32.partialorder %v1205_v8, 0.0  ;;  %vm524_vm3 = vcmp.ge.f32.partialorder %v1207_v11, 0.0 }
 0x19e   :  { %v527_v13 = vmul.f32 0.2, %v1163_v44  ;;  %v528_v16 = vmul.f32 0.2, %v1165_v50  ;;  %v529_v17 = vmul.f32 0.2, %v1167_v54  ;;  %v551_v23 = vsel %vm501_vm4, %v476_v47, %v526_v12 }
 0x19f   :  { %v530_v18 = vmul.f32 0.2, %v1169_v59  ;;  %v531_v21 = vmul.f32 0.2, %v1171_v0  ;;  %v532_v22 = vmul.f32 0.2, %v1173_v5 }
 0x1a0   :  { %v533_v26 = vmul.f32 0.2, %v1175_v10  ;;  %v534_v27 = vmul.f32 0.2, %v1177_v15  ;;  %v535_v28 = vmul.f32 0.2, %v1179_v20  ;;  %v552_v30 = vsel %vm502_vm5, %v1163_v44, %v527_v13 }
 0x1a1   :  { %576 = vst [vmem:[#allocation2] sm:$0xff] %v551_v23  ;;  %v536_v31 = vmul.f32 0.2, %v1181_v51  ;;  %v537_v32 = vmul.f32 0.2, %v1183_v52  ;;  %v553_v36 = vsel %vm503_vm6, %v1165_v50, %v528_v16  ;;  %577 = vst [vmem:[#allocation2 + $0x8] sm:$0xff] %v552_v30  ;;  %v554_v42 = vsel %vm504_vm7, %v1167_v54, %v529_v17 }
 0x1a2   :  { %v538_v33 = vmul.f32 0.2, %v1185_v55  ;;  %v539_v37 = vmul.f32 0.2, %v1187_v56  ;;  %v540_v40 = vmul.f32 0.2, %v1189_v57  ;;  %v555_v34 = vsel %vm505_vm8, %v1169_v59, %v530_v18 }
 0x1a3   :  { %v541_v41 = vmul.f32 0.2, %v1191_v60  ;;  %578 = vst [vmem:[#allocation2 + $0x10] sm:$0xff] %v553_v36  ;;  %v542_v1 = vmul.f32 0.2, %v1193_v61  ;;  %579 = vst [vmem:[#allocation2 + $0x18] sm:$0xff] %v554_v42  ;;  %v556_v53 = vsel %vm506_vm9, %v1171_v0, %v531_v21  ;;  %v561_v19 = vsel %vm511_vm14, %v1181_v51, %v536_v31 }
 0x1a4   :  { %v543_v45 = vmul.f32 0.2, %v1195_v62  ;;  %v544_v25 = vmul.f32 0.2, %v1197_v2  ;;  %v545_v38 = vmul.f32 0.2, %v1199_v3  ;;  %v562_v24 = vsel %vm512_vm15, %v1183_v52, %v537_v32 }
 0x1a5   :  { %v546_v43 = vmul.f32 0.2, %v1201_v6  ;;  %v547_v48 = vmul.f32 0.2, %v1203_v7  ;;  %580 = vst [vmem:[#allocation2 + $0x20] sm:$0xff] %v555_v34  ;;  %vm1352_vm4 = vcmp.ge.f32.partialorder %v1173_v5, 0.0  ;;  %v567_v44 = vsel %vm517_vm10, %v1193_v61, %v542_v1 }
 0x1a6   :  { %v548_v58 = vmul.f32 0.2, %v1205_v8  ;;  %v549_v46 = vmul.f32 0.2, %v1207_v11  ;;  %v557_v63 = vsel %vm1352_vm4, %v1173_v5, %v532_v22  ;;  %vm1353_vm5 = vcmp.ge.f32.partialorder %v1175_v10, 0.0  ;;  %581 = vst [vmem:[#allocation2 + $0x28] sm:$0xff] %v556_v53 }
 0x1a7   :  { %v558_v4 = vsel %vm1353_vm5, %v1175_v10, %v533_v26  ;;  %vm1354_vm6 = vcmp.ge.f32.partialorder %v1177_v15, 0.0  ;;  %vm1355_vm7 = vcmp.ge.f32.partialorder %v1179_v20, 0.0  ;;  %582 = vst [vmem:[#allocation2 + $0x30] sm:$0xff] %v557_v63  ;;  %vm1356_vm8 = vcmp.ge.f32.partialorder %v1185_v55, 0.0  ;;  %586 = vst [vmem:[#allocation2 + $0x50] sm:$0xff] %v561_v19 }
 0x1a8   :  { %v559_v9 = vsel %vm1354_vm6, %v1177_v15, %v534_v27  ;;  %v560_v14 = vsel %vm1355_vm7, %v1179_v20, %v535_v28  ;;  %583 = vst [vmem:[#allocation2 + $0x38] sm:$0xff] %v558_v4  ;;  %v563_v29 = vsel %vm1356_vm8, %v1185_v55, %v538_v33  ;;  %vm1357_vm9 = vcmp.ge.f32.partialorder %v1187_v56, 0.0  ;;  %587 = vst [vmem:[#allocation2 + $0x58] sm:$0xff] %v562_v24 }
 0x1a9   :  { %v564_v35 = vsel %vm1357_vm9, %v1187_v56, %v539_v37  ;;  %vm1358_vm4 = vcmp.ge.f32.partialorder %v1189_v57, 0.0  ;;  %vm1359_vm14 = vcmp.ge.f32.partialorder %v1191_v60, 0.0  ;;  %584 = vst [vmem:[#allocation2 + $0x40] sm:$0xff] %v559_v9  ;;  %585 = vst [vmem:[#allocation2 + $0x48] sm:$0xff] %v560_v14  ;;  %v568_v49 = vsel %vm518_vm11, %v1195_v62, %v543_v45 }
 0x1aa   :  { %v565_v39 = vsel %vm1358_vm4, %v1189_v57, %v540_v40  ;;  %v566_v47 = vsel %vm1359_vm14, %v1191_v60, %v541_v41  ;;  %v569_v50 = vsel %vm519_vm12, %v1197_v2, %v544_v25  ;;  %v570_v54 = vsel %vm520_vm13, %v1199_v3, %v545_v38  ;;  %588 = vst [vmem:[#allocation2 + $0x60] sm:$0xff] %v563_v29 }
 0x1ab   :  { %589 = vst [vmem:[#allocation2 + $0x68] sm:$0xff] %v564_v35  ;;  %590 = vst [vmem:[#allocation2 + $0x70] sm:$0xff] %v565_v39  ;;  %v571_v59 = vsel %vm521_vm0, %v1201_v6, %v546_v43  ;;  %v572_v0 = vsel %vm522_vm1, %v1203_v7, %v547_v48  ;;  %v573_v5 = vsel %vm523_vm2, %v1205_v8, %v548_v58 }
 0x1ac   :  { %591 = vst [vmem:[#allocation2 + $0x78] sm:$0xff] %v566_v47  ;;  %v574_v10 = vsel %vm524_vm3, %v1207_v11, %v549_v46  ;;  %592 = vst [vmem:[#allocation2 + $0x80] sm:$0xff] %v567_v44 }
 0x1ad   :  { %593 = vst [vmem:[#allocation2 + $0x88] sm:$0xff] %v568_v49  ;;  %594 = vst [vmem:[#allocation2 + $0x90] sm:$0xff] %v569_v50 }
 0x1ae   :  { %595 = vst [vmem:[#allocation2 + $0x98] sm:$0xff] %v570_v54  ;;  %596 = vst [vmem:[#allocation2 + $0xa0] sm:$0xff] %v571_v59 }
 0x1af   :  { %597 = vst [vmem:[#allocation2 + $0xa8] sm:$0xff] %v572_v0  ;;  %598 = vst [vmem:[#allocation2 + $0xb0] sm:$0xff] %v573_v5 }
 0x1b0   :  { %599 = vst [vmem:[#allocation2 + $0xb8] sm:$0xff] %v574_v10 }
 0x1b1   :  { %789 = shalt.err (!%p786_p4)
}
 0x1b2   :  { %s790_s27 = scalar_lea.hbm %s1351_s4, 3200 }
 0x1b3   :  { %p791_p5 = scmp.ne.s32.totalorder %s1351_s4, %s790_s27  ;;  %p794_p6 = scmp.lt.u32.totalorder %s790_s27, %s1351_s4 }
 0x1b5   :  { %p796_p7 = pnand %p794_p6, %p791_p5 }
 0x1b7   :  { %799 = shalt.err (!%p796_p7)
}
 0x1b8   :  { %s806_s5 = smov 128   ;;  %s807_s6 = smov 8  }
 0x1b9   :  { %612 = dma.vmem_to_hbm [thread:$0]  %s1304_s3, 3200, %s1351_s4, [#allocation3], %s806_s5, %s806_s5, %s807_s6  }
 0x1ba   :  { %800 = dma.done.wait [#allocation3], 3200  }
 0x1bb   :  { %801 = vsyncadd [#allocation3], 4294964096 }
 0x1bc   :  { %616 = vsyncpa [#allocation3], 1 }

</bundles_post_ra>
